<compile_context>
chip_gen: v5e
topology: v5e:2x2
jax: 0.10.0
libtpu: 0.0.40
codegen_flags: <defaults>
</compile_context>

<pallas_src>
import math
import functools

import jax
import jax.numpy as jnp
from jax import lax
from jax.experimental import pallas as pl
from jax.experimental.pallas import tpu as pltpu


def _round_up(x, m):
    return ((x + m - 1) // m) * m


# ----------------------------- Pallas kernels -------------------------------

def _patch_embed_norm_kernel(p_ref, w_ref, b_ref, g_ref, beta_ref, o_ref, *, eps):
    # p_ref: (tm, K) patch rows; w_ref: (K, E); b_ref/g_ref/beta_ref: (1, E); o_ref: (tm, E)
    y = jnp.dot(p_ref[...], w_ref[...], preferred_element_type=jnp.float32)
    y = y + b_ref[...]
    # LayerNorm over embed_dim (matches nn.LayerNorm(embed_dim), eps=1e-5, biased variance)
    mean = jnp.mean(y, axis=-1, keepdims=True)
    yc = y - mean
    var = jnp.mean(yc * yc, axis=-1, keepdims=True)
    y = yc * lax.rsqrt(var + eps) * g_ref[...] + beta_ref[...]
    o_ref[...] = y.astype(o_ref.dtype)


def _patch_embed_kernel(p_ref, w_ref, b_ref, o_ref):
    # Same as above but norm_layer=None: just conv-as-matmul + bias.
    y = jnp.dot(p_ref[...], w_ref[...], preferred_element_type=jnp.float32)
    o_ref[...] = (y + b_ref[...]).astype(o_ref.dtype)


# ------------------------------- wrapper -------------------------------------

@functools.partial(jax.jit, static_argnames=("patch_size", "use_norm", "eps", "row_tile"))
def patch_embed_2d(x, params, *, patch_size=4, use_norm=True, eps=1e-5, row_tile=512):
    """PatchEmbed2D.forward: x (B, C, H, W) -> (B, H/p, W/p, embed_dim)."""
    B, C, H, W = x.shape
    p = patch_size
    assert H % p == 0 and W % p == 0, "spatial dims must be divisible by patch_size"
    Hp, Wp = H // p, W // p
    E = params["proj_w"].shape[0]
    K = C * p * p
    M = B * Hp * Wp

    # --- layout plumbing (single XLA transpose; no compute, negligible vs the (M,E) output) ---
    # patches[(b,oh,ow), (i,j,c)] = x[b, c, oh*p+i, ow*p+j]
    patches = (x.reshape(B, C, Hp, p, Wp, p)
                 .transpose(0, 2, 4, 3, 5, 1)
                 .reshape(M, K))
    # wmat[(i,j,c), e] = conv_w[e, c, i, j]
    wmat = params["proj_w"].transpose(2, 3, 1, 0).reshape(K, E)
    bias = params["proj_b"].reshape(1, E)

    # Row tiling: big tiles for MXU fill / HBM roofline; pad M so blocks divide evenly.
    tm = min(row_tile, _round_up(M, 8))
    M_pad = _round_up(M, tm)
    if M_pad != M:
        patches = jnp.pad(patches, ((0, M_pad - M), (0, 0)))

    in_specs = [
        pl.BlockSpec((tm, K), lambda i: (i, 0)),   # patch rows, tiled over grid
        pl.BlockSpec((K, E), lambda i: (0, 0)),    # weights, resident
        pl.BlockSpec((1, E), lambda i: (0, 0)),    # bias
    ]
    operands = [patches, wmat, bias]
    if use_norm:
        kernel = functools.partial(_patch_embed_norm_kernel, eps=eps)
        in_specs += [pl.BlockSpec((1, E), lambda i: (0, 0)),
                     pl.BlockSpec((1, E), lambda i: (0, 0))]
        operands += [params["norm_w"].reshape(1, E), params["norm_b"].reshape(1, E)]
    else:
        kernel = _patch_embed_kernel

    out = pl.pallas_call(
        kernel,
        out_shape=jax.ShapeDtypeStruct((M_pad, E), jnp.float32),
        grid=(M_pad // tm,),
        in_specs=in_specs,
        out_specs=pl.BlockSpec((tm, E), lambda i: (i, 0)),
        compiler_params=pltpu.CompilerParams(
            dimension_semantics=("parallel",)),          # lets v7x shard row tiles over 2 TCs
    )(*operands)

    return out[:M].reshape(B, Hp, Wp, E)


# --------------------------- pure-JAX reference -------------------------------

def _reference(x, params, patch_size, use_norm, eps=1e-5):
    p = patch_size
    y = lax.conv_general_dilated(
        x, params["proj_w"], window_strides=(p, p), padding="VALID",
        dimension_numbers=("NCHW", "OIHW", "NCHW"),
        precision=lax.Precision.HIGHEST)
    y = jnp.transpose(y, (0, 2, 3, 1)) + params["proj_b"]
    if use_norm:
        mean = jnp.mean(y, axis=-1, keepdims=True)
        var = jnp.mean((y - mean) ** 2, axis=-1, keepdims=True)
        y = (y - mean) * lax.rsqrt(var + eps) * params["norm_w"] + params["norm_b"]
    return y


# --------------------------------- demo ---------------------------------------

if __name__ == "__main__":
    B, C, H, W = 2, 3, 32, 32
    patch_size = 4
    embed_dim = 128          # lane-dense embed dim; kernel works for any embed_dim

    key = jax.random.PRNGKey(0)
    kx, kw, kb = jax.random.split(key, 3)
    bound = 1.0 / math.sqrt(C * patch_size * patch_size)     # nn.Conv2d default init bound
    params = {
        "proj_w": jax.random.uniform(kw, (embed_dim, C, patch_size, patch_size),
                                     jnp.float32, -bound, bound),
        "proj_b": jax.random.uniform(kb, (embed_dim,), jnp.float32, -bound, bound),
        "norm_w": jnp.ones((embed_dim,), jnp.float32),
        "norm_b": jnp.zeros((embed_dim,), jnp.float32),
    }
    x = jax.random.normal(kx, (B, C, H, W), jnp.float32)

    out_norm = patch_embed_2d(x, params, patch_size=patch_size, use_norm=True)
    out_plain = patch_embed_2d(x, params, patch_size=patch_size, use_norm=False)
    jax.block_until_ready((out_norm, out_plain))

    Hp, Wp = H // patch_size, W // patch_size
    assert out_norm.shape == (B, Hp, Wp, embed_dim)
    assert out_plain.shape == (B, Hp, Wp, embed_dim)
    assert bool(jnp.all(jnp.isfinite(out_norm))) and bool(jnp.all(jnp.isfinite(out_plain)))

    ref_norm = _reference(x, params, patch_size, True)
    ref_plain = _reference(x, params, patch_size, False)
    assert float(jnp.max(jnp.abs(out_norm - ref_norm))) < 1e-2
    assert float(jnp.max(jnp.abs(out_plain - ref_plain))) < 1e-2

    print("KERNEL_OK")
</pallas_src>

<mosaic_0001>
module attributes {stable_mosaic.version = 11 : i64} {
  func.func @_patch_embed_norm_kernel(%arg0: i32, %arg1: memref<128x48xf32, #tpu.memory_space<vmem>>, %arg2: memref<48x128xf32, #tpu.memory_space<vmem>>, %arg3: memref<1x128xf32, #tpu.memory_space<vmem>>, %arg4: memref<1x128xf32, #tpu.memory_space<vmem>>, %arg5: memref<1x128xf32, #tpu.memory_space<vmem>>, %arg6: memref<128x128xf32, #tpu.memory_space<vmem>>) attributes {dimension_semantics = [#tpu.dimension_semantics<parallel>], iteration_bounds = array<i64: 1>, scalar_prefetch = 0 : i64, scratch_operands = 0 : i64, tpu.core_type = #tpu.core_type<tc>, window_params = [{transform_indices = @transform_0, window_bounds = array<i64: 128, 48>}, {pipeline_mode = #tpu.pipeline_mode<synchronous>, transform_indices = @transform_1, window_bounds = array<i64: 48, 128>}, {pipeline_mode = #tpu.pipeline_mode<synchronous>, transform_indices = @transform_2, window_bounds = array<i64: 1, 128>}, {pipeline_mode = #tpu.pipeline_mode<synchronous>, transform_indices = @transform_3, window_bounds = array<i64: 1, 128>}, {pipeline_mode = #tpu.pipeline_mode<synchronous>, transform_indices = @transform_4, window_bounds = array<i64: 1, 128>}, {transform_indices = @transform_5, window_bounds = array<i64: 128, 128>}]} {
    %c0 = arith.constant 0 : index
    %c0_0 = arith.constant 0 : index
    %0 = vector.load %arg1[%c0, %c0_0] : memref<128x48xf32, #tpu.memory_space<vmem>>, vector<128x48xf32>
    %c0_1 = arith.constant 0 : index
    %c0_2 = arith.constant 0 : index
    %1 = vector.load %arg2[%c0_1, %c0_2] : memref<48x128xf32, #tpu.memory_space<vmem>>, vector<48x128xf32>
    %cst = arith.constant dense<0.000000e+00> : vector<128x128xf32>
    %2 = tpu.matmul %0, %1, %cst {dimension_numbers = #tpu.dot_dimension_numbers<[1], [0], [0], [1], [0, 0, 1, 1], [], []>} : vector<128x48xf32>, vector<48x128xf32>, vector<128x128xf32> -> vector<128x128xf32>
    %c0_3 = arith.constant 0 : index
    %c0_4 = arith.constant 0 : index
    %3 = vector.load %arg3[%c0_3, %c0_4] : memref<1x128xf32, #tpu.memory_space<vmem>>, vector<1x128xf32>
    %4 = vector.broadcast %3 : vector<1x128xf32> to vector<128x128xf32>
    %5 = arith.addf %2, %4 : vector<128x128xf32>
    %cst_5 = arith.constant dense<0.000000e+00> : vector<128xf32>
    %6 = vector.multi_reduction <add>, %5, %cst_5 [1] : vector<128x128xf32> to vector<128xf32>
    %7 = vector.shape_cast %6 : vector<128xf32> to vector<128x1xf32>
    %cst_6 = arith.constant 1.280000e+02 : f32
    %8 = vector.broadcast %cst_6 : f32 to vector<128x1xf32>
    %9 = arith.divf %7, %8 : vector<128x1xf32>
    %10 = vector.broadcast %9 : vector<128x1xf32> to vector<128x128xf32>
    %11 = arith.subf %5, %10 : vector<128x128xf32>
    %12 = arith.mulf %11, %11 : vector<128x128xf32>
    %cst_7 = arith.constant dense<0.000000e+00> : vector<128xf32>
    %13 = vector.multi_reduction <add>, %12, %cst_7 [1] : vector<128x128xf32> to vector<128xf32>
    %14 = vector.shape_cast %13 : vector<128xf32> to vector<128x1xf32>
    %cst_8 = arith.constant 1.280000e+02 : f32
    %15 = vector.broadcast %cst_8 : f32 to vector<128x1xf32>
    %16 = arith.divf %14, %15 : vector<128x1xf32>
    %cst_9 = arith.constant 9.99999974E-6 : f32
    %17 = vector.broadcast %cst_9 : f32 to vector<128x1xf32>
    %18 = arith.addf %16, %17 : vector<128x1xf32>
    %19 = math.rsqrt %18 : vector<128x1xf32>
    %20 = vector.broadcast %19 : vector<128x1xf32> to vector<128x128xf32>
    %21 = arith.mulf %11, %20 : vector<128x128xf32>
    %c0_10 = arith.constant 0 : index
    %c0_11 = arith.constant 0 : index
    %22 = vector.load %arg4[%c0_10, %c0_11] : memref<1x128xf32, #tpu.memory_space<vmem>>, vector<1x128xf32>
    %23 = vector.broadcast %22 : vector<1x128xf32> to vector<128x128xf32>
    %24 = arith.mulf %21, %23 : vector<128x128xf32>
    %c0_12 = arith.constant 0 : index
    %c0_13 = arith.constant 0 : index
    %25 = vector.load %arg5[%c0_12, %c0_13] : memref<1x128xf32, #tpu.memory_space<vmem>>, vector<1x128xf32>
    %26 = vector.broadcast %25 : vector<1x128xf32> to vector<128x128xf32>
    %27 = arith.addf %24, %26 : vector<128x128xf32>
    %c0_14 = arith.constant 0 : index
    %c0_15 = arith.constant 0 : index
    %28 = vector.load %arg6[%c0_14, %c0_15] : memref<128x128xf32, #tpu.memory_space<vmem>>, vector<128x128xf32>
    tpu.vector_store %arg6[%c0_14, %c0_15], %27 {strides = array<i32>} : memref<128x128xf32, #tpu.memory_space<vmem>>, vector<128x128xf32>,
    return
  }
  func.func @transform_0(%arg0: i32) -> (i32, i32) {
    %c0_i32 = arith.constant 0 : i32
    %c0_i32_0 = arith.constant 0 : i32
    return %arg0, %c0_i32 : i32, i32
  }
  func.func @transform_1(%arg0: i32) -> (i32, i32) {
    %c0_i32 = arith.constant 0 : i32
    %c0_i32_0 = arith.constant 0 : i32
    %c0_i32_1 = arith.constant 0 : i32
    return %c0_i32, %c0_i32_0 : i32, i32
  }
  func.func @transform_2(%arg0: i32) -> (i32, i32) {
    %c0_i32 = arith.constant 0 : i32
    %c0_i32_0 = arith.constant 0 : i32
    %c0_i32_1 = arith.constant 0 : i32
    return %c0_i32, %c0_i32_0 : i32, i32
  }
  func.func @transform_3(%arg0: i32) -> (i32, i32) {
    %c0_i32 = arith.constant 0 : i32
    %c0_i32_0 = arith.constant 0 : i32
    %c0_i32_1 = arith.constant 0 : i32
    return %c0_i32, %c0_i32_0 : i32, i32
  }
  func.func @transform_4(%arg0: i32) -> (i32, i32) {
    %c0_i32 = arith.constant 0 : i32
    %c0_i32_0 = arith.constant 0 : i32
    %c0_i32_1 = arith.constant 0 : i32
    return %c0_i32, %c0_i32_0 : i32, i32
  }
  func.func @transform_5(%arg0: i32) -> (i32, i32) {
    %c0_i32 = arith.constant 0 : i32
    %c0_i32_0 = arith.constant 0 : i32
    return %arg0, %c0_i32 : i32, i32
  }
}

</mosaic_0001>

<bundles_post_ra>
// kernel: patch_embed_2d.1
= control target key start
LH: loop header
LB: loop body
LE: loop exit
PB: predicated region body
PF: predicated region fallthrough
CT: control target
= control target key end

     0   :  { %s1084_s0 = inlined_call_operand.vmem [shape: f32[128,48], index: 0, kind: input, shape index: {}]   ;;  %s1085_s1 = inlined_call_operand.vmem [shape: f32[48,128], index: 1, kind: input, shape index: {}]   ;;  %s1086_s2 = inlined_call_operand.vmem [shape: f32[1,128], index: 2, kind: input, shape index: {}]   ;;  %s1087_s3 = inlined_call_operand.vmem [shape: f32[1,128], index: 3, kind: input, shape index: {}]   ;;  %s1088_s4 = inlined_call_operand.vmem [shape: f32[1,128], index: 4, kind: input, shape index: {}]   ;;  %s1089_s5 = inlined_call_operand.hbm [shape: f32[128,128], index: 5, kind: output, shape index: {}]  }
   0x1   :  { %v42_v0 = vld [vmem:[%s1085_s1 + $0x28] sm:$0xff]  ;;  %v41_v1 = vld [vmem:[%s1085_s1 + $0x20] sm:$0xff]  ;;  %v40_v2 = vld [vmem:[%s1085_s1 + $0x18] sm:$0xff] }
   0x2   :  { %106 = vmatpush.msra.mxu0 %v42_v0  ;;  %578 = vmatpush.msra.mxu1 %v42_v0  ;;  %v39_v3 = vld [vmem:[%s1085_s1 + $0x10] sm:$0xff]  ;;  %v38_v4 = vld [vmem:[%s1085_s1 + $0x8] sm:$0xff]  ;;  %v37_v5 = vld [vmem:[%s1085_s1] sm:$0xff] }
   0x3   :  { %579 = vmatpush.msra.mxu2 %v42_v0  ;;  %580 = vmatpush.msra.mxu3 %v42_v0 }
   0x4   :  { %107 = vmatpush.msra.mxu0 %v41_v1  ;;  %581 = vmatpush.msra.mxu1 %v41_v1 }
   0x5   :  { %582 = vmatpush.msra.mxu2 %v41_v1  ;;  %583 = vmatpush.msra.mxu3 %v41_v1 }
   0x6   :  { %108 = vmatpush.msra.mxu0 %v40_v2  ;;  %584 = vmatpush.msra.mxu1 %v40_v2 }
   0x7   :  { %585 = vmatpush.msra.mxu2 %v40_v2  ;;  %586 = vmatpush.msra.mxu3 %v40_v2 }
   0x8   :  { %109 = vmatpush.msra.mxu0 %v39_v3  ;;  %587 = vmatpush.msra.mxu1 %v39_v3 }
   0x9   :  { %588 = vmatpush.msra.mxu2 %v39_v3  ;;  %589 = vmatpush.msra.mxu3 %v39_v3 }
   0xa   :  { %10 = vsyncpa [#allocation3], 0  ;;  %110 = vmatpush.msra.mxu0 %v38_v4  ;;  %590 = vmatpush.msra.mxu1 %v38_v4  ;;  %v21_v6 = vld [vmem:[%s1084_s0] sm:$0xff]  ;;  %vm47_vm0 = vcmask 392192   ;;  %v22_v10 = vld [vmem:[%s1084_s0 + $0x8] sm:$0xff]  ;;  %v663_v55 = vmov 128.0  }
   0xb   :  { %591 = vmatpush.msra.mxu2 %v38_v4  ;;  %592 = vmatpush.msra.mxu3 %v38_v4  ;;  %v25_v7 = vld [vmem:[%s1084_s0 + $0x20] sm:$0xff]  ;;  %v26_v11 = vld [vmem:[%s1084_s0 + $0x28] sm:$0xff]  ;;  %v23_v14 = vld [vmem:[%s1084_s0 + $0x10] sm:$0xff]  ;;  %603 = vrcp.f32 %v663_v55  ;;  %s550_s16 = sshll.u32 %s1089_s5, 4  ;;  %s665_s17 = smov 128   ;;  %s551_s16 = int_to_ptr.hbm [resolvable:$true] %s550_s16 }
   0xc   :  { %111 = vmatpush.msra.mxu0 %v37_v5  ;;  %593 = vmatpush.msra.mxu1 %v37_v5  ;;  %v29_v8 = vld [vmem:[%s1084_s0 + $0x40] sm:$0xff]  ;;  %v30_v12 = vld [vmem:[%s1084_s0 + $0x48] sm:$0xff]  ;;  %v27_v15 = vld [vmem:[%s1084_s0 + $0x30] sm:$0xff]  ;;  %s666_s18 = smov 8  }
   0xd   :  { %v33_v9 = vld [vmem:[%s1084_s0 + $0x60] sm:$0xff]  ;;  %594 = vmatpush.msra.mxu2 %v37_v5  ;;  %595 = vmatpush.msra.mxu3 %v37_v5  ;;  %v34_v13 = vld [vmem:[%s1084_s0 + $0x68] sm:$0xff]  ;;  %v31_v16 = vld [vmem:[%s1084_s0 + $0x50] sm:$0xff] }
   0xe   :  { %562 = vmatmul.msk.f32.vlgmr.msra.gmra.mxu0 %vm47_vm0, %v21_v6  ;;  %566 = vmatmul.msk.f32.vlgmr.msra.gmra.mxu1 %vm47_vm0, %v25_v7  ;;  %v35_v17 = vld [vmem:[%s1084_s0 + $0x70] sm:$0xff]  ;;  %v24_v18 = vld [vmem:[%s1084_s0 + $0x18] sm:$0xff]  ;;  %v600_v22 = vld [vmem:[%s1086_s2] ss:$0 sm:$0xff] }
   0xf   :  { %570 = vmatmul.msk.f32.vlgmr.msra.gmra.mxu2 %vm47_vm0, %v29_v8  ;;  %574 = vmatmul.msk.f32.vlgmr.msra.gmra.mxu3 %vm47_vm0, %v33_v9  ;;  %v28_v19 = vld [vmem:[%s1084_s0 + $0x38] sm:$0xff] }
  0x10   :  { %v32_v20 = vld [vmem:[%s1084_s0 + $0x58] sm:$0xff] }
  0x11   :  { %v36_v21 = vld [vmem:[%s1084_s0 + $0x78] sm:$0xff]  ;;  %v604_v56 = vpop.eup %603 }
  0x12   :  { %v194_v57 = vmul.f32 128.0, %v604_v56  ;;  %vm198_vm1 = vweird.f32 %v604_v56 }
  0x14   :  { %v195_v58 = vsub.f32 1.0, %v194_v57 }
  0x16   :  { %563 = vmatmul.msk.f32.gmra.mxu0 %vm47_vm0, %v22_v10  ;;  %567 = vmatmul.msk.f32.gmra.mxu1 %vm47_vm0, %v26_v11  ;;  %v196_v59 = vmul.f32 %v604_v56, %v195_v58 }
  0x17   :  { %571 = vmatmul.msk.f32.gmra.mxu2 %vm47_vm0, %v30_v12  ;;  %575 = vmatmul.msk.f32.gmra.mxu3 %vm47_vm0, %v34_v13 }
  0x18   :  { %v197_v60 = vadd.f32 %v604_v56, %v196_v59 }
  0x1a   :  { %v824_v61 = vsel %vm198_vm1, %v604_v56, %v197_v60 }
  0x1e   :  { %564 = vmatmul.msk.f32.gmra.mxu0 %vm47_vm0, %v23_v14  ;;  %568 = vmatmul.msk.f32.gmra.mxu1 %vm47_vm0, %v27_v15 }
  0x1f   :  { %572 = vmatmul.msk.f32.gmra.mxu2 %vm47_vm0, %v31_v16  ;;  %576 = vmatmul.msk.f32.gmra.mxu3 %vm47_vm0, %v35_v17 }
  0x26   :  { %565 = vmatmul.msk.f32.gmra.mxu0 %vm47_vm0, %v24_v18  ;;  %569 = vmatmul.msk.f32.gmra.mxu1 %vm47_vm0, %v28_v19 }
  0x27   :  { %573 = vmatmul.msk.f32.gmra.mxu2 %vm47_vm0, %v32_v20  ;;  %577 = vmatmul.msk.f32.gmra.mxu3 %vm47_vm0, %v36_v21 }
  0x8b   :  { %v113_v23 = vpop.f32.mrf.mxu0  ;;  %v125_v24 = vpop.f32.mrf.mxu1 }
  0x8c   :  { %v114_v25 = vadd.f32 %v600_v22, %v113_v23  ;;  %v126_v26 = vadd.f32 %v600_v22, %v125_v24 }
  0x8e   :  { %169 = vadd.xlane.f32.xlu2 %v126_v26  ;;  %161 = vadd.xlane.f32.xlu0 %v114_v25 }
  0x92   :  { %v137_v27 = vpop.f32.mrf.mxu2  ;;  %v149_v28 = vpop.f32.mrf.mxu3 }
  0x93   :  { %v782_v29 = vadd.f32 %v600_v22, %v137_v27  ;;  %v784_v30 = vadd.f32 %v600_v22, %v149_v28  ;;  %v116_v31 = vpop.f32.mrf.mxu0  ;;  %v128_v32 = vpop.f32.mrf.mxu1 }
  0x94   :  { %v788_v35 = vadd.f32 %v600_v22, %v128_v32  ;;  %v792_v37 = vadd.f32 %v600_v22, %v116_v31 }
  0x96   :  { %177 = vadd.xlane.f32.xlu2 %v782_v29  ;;  %185 = vadd.xlane.f32.xlu0 %v784_v30 }
  0x9a   :  { %v140_v33 = vpop.f32.mrf.mxu2  ;;  %v152_v34 = vpop.f32.mrf.mxu3 }
  0x9b   :  { %v790_v36 = vadd.f32 %v600_v22, %v152_v34  ;;  %v119_v38 = vpop.f32.mrf.mxu0  ;;  %v799_v41 = vadd.f32 %v600_v22, %v140_v33  ;;  %v131_v43 = vpop.f32.mrf.mxu1 }
  0x9c   :  { %v797_v39 = vadd.f32 %v600_v22, %v119_v38  ;;  %v805_v46 = vadd.f32 %v600_v22, %v131_v43 }
  0x9d   :  { %187 = vadd.xlane.f32.xlu1 %v790_v36 }
  0x9e   :  { %171 = vadd.xlane.f32.xlu2 %v788_v35  ;;  %163 = vadd.xlane.f32.xlu0 %v792_v37 }
  0xa2   :  { %v143_v40 = vpop.f32.mrf.mxu2  ;;  %v155_v42 = vpop.f32.mrf.mxu3 }
  0xa3   :  { %v803_v44 = vadd.f32 %v600_v22, %v143_v40  ;;  %v122_v48 = vpop.f32.mrf.mxu0  ;;  %v812_v50 = vadd.f32 %v600_v22, %v155_v42  ;;  %v134_v53 = vpop.f32.mrf.mxu1 }
  0xa4   :  { %v814_v51 = vadd.f32 %v600_v22, %v122_v48  ;;  %v821_v54 = vadd.f32 %v600_v22, %v134_v53 }
  0xa5   :  { %165 = vadd.xlane.f32.xlu1 %v797_v39 }
  0xa6   :  { %179 = vadd.xlane.f32.xlu0 %v799_v41 }
  0xaa   :  { %v146_v45 = vpop.f32.mrf.mxu2  ;;  %v158_v49 = vpop.f32.mrf.mxu3 }
  0xab   :  { %v807_v47 = vadd.f32 %v600_v22, %v146_v45  ;;  %v816_v52 = vadd.f32 %v600_v22, %v158_v49 }
  0xad   :  { %183 = vadd.xlane.f32.xlu2 %v807_v47  ;;  %181 = vadd.xlane.f32.xlu1 %v803_v44 }
  0xae   :  { %173 = vadd.xlane.f32.xlu0 %v805_v46 }
  0xb5   :  { %189 = vadd.xlane.f32.xlu2 %v812_v50  ;;  %167 = vadd.xlane.f32.xlu1 %v814_v51 }
  0xb6   :  { %191 = vadd.xlane.f32.xlu0 %v816_v52 }
  0xbd   :  { %175 = vadd.xlane.f32.xlu1 %v821_v54 }
 0x101   :  { %v170_v62 = vpop.xlane.xlu2 %169  ;;  %v162_v63 = vpop.xlane.xlu0 %161 }
 0x102   :  { %v204_v0 = vmul.f32 %v824_v61, %v170_v62  ;;  %v200_v1 = vmul.f32 %v824_v61, %v162_v63 }
 0x104   :  { %v828_v2 = vsub.f32 %v126_v26, %v204_v0  ;;  %v830_v3 = vsub.f32 %v114_v25, %v200_v1 }
 0x106   :  { %v236_v4 = vmul.f32 %v828_v2, %v828_v2  ;;  %v232_v5 = vmul.f32 %v830_v3, %v830_v3 }
 0x108   :  { %256 = vadd.xlane.f32.xlu2 %v236_v4  ;;  %248 = vadd.xlane.f32.xlu1 %v232_v5 }
 0x109   :  { %v178_v6 = vpop.xlane.xlu2 %177  ;;  %v186_v7 = vpop.xlane.xlu0 %185 }
 0x10a   :  { %v208_v8 = vmul.f32 %v824_v61, %v178_v6  ;;  %v212_v9 = vmul.f32 %v824_v61, %v186_v7 }
 0x10c   :  { %v839_v10 = vsub.f32 %v782_v29, %v208_v8  ;;  %v842_v11 = vsub.f32 %v784_v30, %v212_v9 }
 0x10e   :  { %v240_v12 = vmul.f32 %v839_v10, %v839_v10  ;;  %v244_v13 = vmul.f32 %v842_v11, %v842_v11 }
 0x110   :  { %v188_v14 = vpop.xlane.xlu1 %187  ;;  %264 = vadd.xlane.f32.xlu0 %v240_v12  ;;  %272 = vadd.xlane.f32.xlu1 %v244_v13 }
 0x111   :  { %v172_v15 = vpop.xlane.xlu2 %171  ;;  %v164_v16 = vpop.xlane.xlu0 %163  ;;  %v213_v60 = vmul.f32 %v824_v61, %v188_v14 }
 0x112   :  { %v205_v17 = vmul.f32 %v824_v61, %v172_v15  ;;  %v201_v18 = vmul.f32 %v824_v61, %v164_v16 }
 0x113   :  { %v916_v0 = vsub.f32 %v790_v36, %v213_v60 }
 0x114   :  { %v851_v19 = vsub.f32 %v788_v35, %v205_v17  ;;  %v854_v20 = vsub.f32 %v792_v37, %v201_v18 }
 0x116   :  { %v237_v21 = vmul.f32 %v851_v19, %v851_v19  ;;  %v233_v22 = vmul.f32 %v854_v20, %v854_v20 }
 0x118   :  { %v166_v23 = vpop.xlane.xlu1 %165  ;;  %258 = vadd.xlane.f32.xlu0 %v237_v21  ;;  %250 = vadd.xlane.f32.xlu2 %v233_v22 }
 0x119   :  { %v202_v24 = vmul.f32 %v824_v61, %v166_v23  ;;  %v180_v25 = vpop.xlane.xlu0 %179 }
 0x11a   :  { %v209_v26 = vmul.f32 %v824_v61, %v180_v25 }
 0x11b   :  { %v863_v27 = vsub.f32 %v797_v39, %v202_v24 }
 0x11c   :  { %v866_v28 = vsub.f32 %v799_v41, %v209_v26 }
 0x11d   :  { %v234_v29 = vmul.f32 %v863_v27, %v863_v27 }
 0x11e   :  { %v241_v30 = vmul.f32 %v866_v28, %v866_v28 }
 0x120   :  { %v184_v31 = vpop.xlane.xlu2 %183  ;;  %v182_v32 = vpop.xlane.xlu1 %181  ;;  %252 = vadd.xlane.f32.xlu0 %v234_v29  ;;  %266 = vadd.xlane.f32.xlu1 %v241_v30 }
 0x121   :  { %v211_v33 = vmul.f32 %v824_v61, %v184_v31  ;;  %v210_v34 = vmul.f32 %v824_v61, %v182_v32  ;;  %v174_v35 = vpop.xlane.xlu0 %173 }
 0x122   :  { %v206_v37 = vmul.f32 %v824_v61, %v174_v35 }
 0x123   :  { %v876_v38 = vsub.f32 %v807_v47, %v211_v33  ;;  %v879_v39 = vsub.f32 %v803_v44, %v210_v34 }
 0x124   :  { %v882_v40 = vsub.f32 %v805_v46, %v206_v37 }
 0x125   :  { %v242_v41 = vmul.f32 %v879_v39, %v879_v39  ;;  %v243_v42 = vmul.f32 %v876_v38, %v876_v38 }
 0x126   :  { %v238_v43 = vmul.f32 %v882_v40, %v882_v40 }
 0x127   :  { %268 = vadd.xlane.f32.xlu2 %v242_v41 }
 0x128   :  { %v190_v45 = vpop.xlane.xlu2 %189  ;;  %v168_v48 = vpop.xlane.xlu1 %167  ;;  %270 = vadd.xlane.f32.xlu0 %v243_v42  ;;  %260 = vadd.xlane.f32.xlu1 %v238_v43  ;;  %v940_v43 = vld [vmem:[%s1087_s3] ss:$0 sm:$0xff]  ;;  %s664_s3 = smov [#allocation2]  }
 0x129   :  { %v214_v44 = vmul.f32 %v824_v61, %v190_v45  ;;  %v203_v47 = vmul.f32 %v824_v61, %v168_v48  ;;  %v192_v53 = vpop.xlane.xlu0 %191 }
 0x12a   :  { %v215_v55 = vmul.f32 %v824_v61, %v192_v53  ;;  %v948_v53 = vld [vmem:[%s1088_s4] ss:$0 sm:$0xff]  ;;  %s548_s4 = sshll.u32 %s664_s3, 4  ;;  %s549_s4 = int_to_ptr.vmem [resolvable:$true] %s548_s4 }
 0x12b   :  { %v893_v46 = vsub.f32 %v812_v50, %v214_v44  ;;  %v896_v49 = vsub.f32 %v814_v51, %v203_v47 }
 0x12c   :  { %v905_v50 = vsub.f32 %v816_v52, %v215_v55  ;;  %v245_v52 = vmul.f32 %v916_v0, %v916_v0 }
 0x12d   :  { %v246_v56 = vmul.f32 %v893_v46, %v893_v46  ;;  %v235_v57 = vmul.f32 %v896_v49, %v896_v49 }
 0x12e   :  { %v247_v63 = vmul.f32 %v905_v50, %v905_v50 }
 0x130   :  { %v176_v58 = vpop.xlane.xlu1 %175  ;;  %276 = vadd.xlane.f32.xlu0 %v246_v56  ;;  %254 = vadd.xlane.f32.xlu1 %v235_v57 }
 0x131   :  { %v207_v59 = vmul.f32 %v824_v61, %v176_v58 }
 0x133   :  { %v908_v51 = vsub.f32 %v821_v54, %v207_v59 }
 0x135   :  { %v239_v62 = vmul.f32 %v908_v51, %v908_v51 }
 0x137   :  { %262 = vadd.xlane.f32.xlu2 %v239_v62 }
 0x138   :  { %278 = vadd.xlane.f32.xlu1 %v247_v63 }
 0x13f   :  { %274 = vadd.xlane.f32.xlu2 %v245_v52 }
 0x17b   :  { %v257_v1 = vpop.xlane.xlu2 %256  ;;  %v249_v54 = vpop.xlane.xlu1 %248 }
 0x17c   :  { %v284_v4 = vmul.f32 %v257_v1, %v824_v61  ;;  %v280_v5 = vmul.f32 %v249_v54, %v824_v61 }
 0x17e   :  { %v300_v6 = vadd.f32 1e-05, %v284_v4  ;;  %v296_v7 = vadd.f32 1e-05, %v280_v5 }
 0x180   :  { %605 = vrsqrt.f32 %v300_v6  ;;  %vm358_vm4 = vweird.f32 %v300_v6  ;;  %vm318_vm6 = vweird.f32 %v296_v7 }
 0x181   :  { %607 = vrsqrt.f32 %v296_v7 }
 0x183   :  { %v273_v8 = vpop.xlane.xlu1 %272  ;;  %v265_v9 = vpop.xlane.xlu0 %264 }
 0x184   :  { %v292_v12 = vmul.f32 %v273_v8, %v824_v61  ;;  %v288_v36 = vmul.f32 %v265_v9, %v824_v61 }
 0x186   :  { %v606_v13 = vpop.eup %605  ;;  %v924_v14 = vadd.f32 1e-05, %v292_v12  ;;  %v926_v15 = vadd.f32 1e-05, %v288_v36 }
 0x187   :  { %v608_v16 = vpop.eup %607  ;;  %v353_v17 = vmul.f32 %v606_v13, %v300_v6  ;;  %vm359_vm2 = vweird.f32 %v606_v13 }
 0x188   :  { %v313_v18 = vmul.f32 %v608_v16, %v296_v7  ;;  %609 = vrsqrt.f32 %v924_v14  ;;  %vm319_vm3 = vweird.f32 %v608_v16  ;;  %vm360_vm5 = vmor %vm358_vm4, %vm359_vm2  ;;  %vm438_vm10 = vweird.f32 %v924_v14 }
 0x189   :  { %v354_v21 = vmul.f32 %v606_v13, %v353_v17  ;;  %611 = vrsqrt.f32 %v926_v15  ;;  %vm320_vm7 = vmor %vm318_vm6, %vm319_vm3  ;;  %vm398_vm12 = vweird.f32 %v926_v15 }
 0x18a   :  { %v314_v22 = vmul.f32 %v608_v16, %v313_v18 }
 0x18b   :  { %v355_v23 = vmul.f32 0.5, %v354_v21  ;;  %v251_v24 = vpop.xlane.xlu2 %250  ;;  %v259_v25 = vpop.xlane.xlu0 %258 }
 0x18c   :  { %v315_v26 = vmul.f32 0.5, %v314_v22  ;;  %v281_v29 = vmul.f32 %v251_v24, %v824_v61  ;;  %v285_v30 = vmul.f32 %v259_v25, %v824_v61 }
 0x18d   :  { %v356_v31 = vsub.f32 1.5, %v355_v23 }
 0x18e   :  { %v610_v32 = vpop.eup %609  ;;  %v316_v33 = vsub.f32 1.5, %v315_v26  ;;  %v932_v34 = vadd.f32 1e-05, %v281_v29  ;;  %v934_v35 = vadd.f32 1e-05, %v285_v30 }
 0x18f   :  { %v612_v37 = vpop.eup %611  ;;  %v357_v41 = vmul.f32 %v606_v13, %v356_v31  ;;  %v433_v42 = vmul.f32 %v610_v32, %v924_v14  ;;  %vm439_vm8 = vweird.f32 %v610_v32 }
 0x190   :  { %v317_v45 = vmul.f32 %v608_v16, %v316_v33  ;;  %v393_v48 = vmul.f32 %v612_v37, %v926_v15  ;;  %613 = vrsqrt.f32 %v932_v34  ;;  %vm399_vm9 = vweird.f32 %v612_v37  ;;  %vm440_vm11 = vmor %vm438_vm10, %vm439_vm8 }
 0x191   :  { %v361_v44 = vsel %vm360_vm5, %v606_v13, %v357_v41  ;;  %v434_v47 = vmul.f32 %v610_v32, %v433_v42  ;;  %615 = vrsqrt.f32 %v934_v35  ;;  %vm400_vm13 = vmor %vm398_vm12, %vm399_vm9  ;;  %vm328_vm14 = vweird.f32 %v932_v34 }
 0x192   :  { %v476_v55 = vmul.f32 %v361_v44, %v828_v2  ;;  %v321_v56 = vsel %vm320_vm7, %v608_v16, %v317_v45  ;;  %v394_v57 = vmul.f32 %v612_v37, %v393_v48  ;;  %vm368_vm2 = vweird.f32 %v934_v35 }
 0x193   :  { %v472_v58 = vmul.f32 %v321_v56, %v830_v3  ;;  %v435_v59 = vmul.f32 0.5, %v434_v47  ;;  %v267_v60 = vpop.xlane.xlu1 %266  ;;  %v253_v62 = vpop.xlane.xlu0 %252 }
 0x194   :  { %v496_v63 = vmul.f32 %v940_v43, %v476_v55  ;;  %v395_v52 = vmul.f32 0.5, %v394_v57  ;;  %v289_v1 = vmul.f32 %v267_v60, %v824_v61  ;;  %v282_v54 = vmul.f32 %v253_v62, %v824_v61 }
 0x195   :  { %v492_v4 = vmul.f32 %v940_v43, %v472_v58  ;;  %v436_v5 = vsub.f32 1.5, %v435_v59 }
 0x196   :  { %v614_v2 = vpop.eup %613  ;;  %v516_v6 = vadd.f32 %v948_v53, %v496_v63  ;;  %v396_v7 = vsub.f32 1.5, %v395_v52  ;;  %v957_v3 = vadd.f32 1e-05, %v289_v1  ;;  %v959_v8 = vadd.f32 1e-05, %v282_v54 }
 0x197   :  { %v616_v9 = vpop.eup %615  ;;  %v512_v12 = vadd.f32 %v948_v53, %v492_v4  ;;  %v437_v36 = vmul.f32 %v610_v32, %v436_v5  ;;  %v323_v13 = vmul.f32 %v614_v2, %v932_v34  ;;  %vm329_vm15 = vweird.f32 %v614_v2 }
 0x198   :  { %532 = vst [vmem:[#allocation2 + $0x20] sm:$0xff] %v516_v6  ;;  %v397_v16 = vmul.f32 %v612_v37, %v396_v7  ;;  %v363_v17 = vmul.f32 %v616_v9, %v934_v35  ;;  %617 = vrsqrt.f32 %v957_v3  ;;  %vm369_vm0 = vweird.f32 %v616_v9  ;;  %vm330_vm1 = vmor %vm328_vm14, %vm329_vm15 }
 0x199   :  { %528 = vst [vmem:[#allocation2] sm:$0xff] %v512_v12  ;;  %v441_v18 = vsel %vm440_vm11, %v610_v32, %v437_v36  ;;  %v324_v21 = vmul.f32 %v614_v2, %v323_v13  ;;  %619 = vrsqrt.f32 %v959_v8  ;;  %vm370_vm3 = vmor %vm368_vm2, %vm369_vm0  ;;  %vm408_vm6 = vweird.f32 %v957_v3 }
 0x19a   :  { %v484_v14 = vmul.f32 %v441_v18, %v842_v11  ;;  %v401_v22 = vsel %vm400_vm13, %v612_v37, %v397_v16  ;;  %v364_v23 = vmul.f32 %v616_v9, %v363_v17  ;;  %v269_v24 = vpop.xlane.xlu2 %268  ;;  %vm338_vm8 = vweird.f32 %v959_v8 }
 0x19b   :  { %v480_v25 = vmul.f32 %v401_v22, %v839_v10  ;;  %v325_v26 = vmul.f32 0.5, %v324_v21  ;;  %v290_v15 = vmul.f32 %v269_v24, %v824_v61  ;;  %v261_v29 = vpop.xlane.xlu1 %260  ;;  %v271_v30 = vpop.xlane.xlu0 %270 }
 0x19c   :  { %v504_v31 = vmul.f32 %v940_v43, %v484_v14  ;;  %v365_v32 = vmul.f32 0.5, %v364_v23  ;;  %v286_v33 = vmul.f32 %v261_v29, %v824_v61  ;;  %v291_v41 = vmul.f32 %v271_v30, %v824_v61 }
 0x19d   :  { %v500_v11 = vmul.f32 %v940_v43, %v480_v25  ;;  %v326_v37 = vsub.f32 1.5, %v325_v26  ;;  %v977_v42 = vadd.f32 1e-05, %v290_v15 }
 0x19e   :  { %v618_v10 = vpop.eup %617  ;;  %v524_v45 = vadd.f32 %v948_v53, %v504_v31  ;;  %v366_v48 = vsub.f32 1.5, %v365_v32  ;;  %v980_v44 = vadd.f32 1e-05, %v286_v33  ;;  %v984_v58 = vadd.f32 1e-05, %v291_v41 }
 0x19f   :  { %v620_v47 = vpop.eup %619  ;;  %v520_v55 = vadd.f32 %v948_v53, %v500_v11  ;;  %v327_v56 = vmul.f32 %v614_v2, %v326_v37  ;;  %v403_v57 = vmul.f32 %v618_v10, %v957_v3  ;;  %621 = vrsqrt.f32 %v977_v42 }
 0x1a0   :  { %540 = vst [vmem:[#allocation2 + $0x60] sm:$0xff] %v524_v45  ;;  %v367_v59 = vmul.f32 %v616_v9, %v366_v48  ;;  %v333_v60 = vmul.f32 %v620_v47, %v959_v8  ;;  %623 = vrsqrt.f32 %v980_v44  ;;  %vm409_vm4 = vweird.f32 %v618_v10 }
 0x1a1   :  { %536 = vst [vmem:[#allocation2 + $0x40] sm:$0xff] %v520_v55  ;;  %v331_v62 = vsel %vm330_vm1, %v614_v2, %v327_v56  ;;  %v404_v63 = vmul.f32 %v618_v10, %v403_v57  ;;  %625 = vrsqrt.f32 %v984_v58  ;;  %vm339_vm5 = vweird.f32 %v620_v47  ;;  %vm410_vm7 = vmor %vm408_vm6, %vm409_vm4 }
 0x1a2   :  { %v473_v52 = vmul.f32 %v331_v62, %v854_v20  ;;  %v371_v1 = vsel %vm370_vm3, %v616_v9, %v367_v59  ;;  %v334_v54 = vmul.f32 %v620_v47, %v333_v60  ;;  %vm340_vm9 = vmor %vm338_vm8, %vm339_vm5  ;;  %vm418_vm10 = vweird.f32 %v977_v42 }
 0x1a3   :  { %v477_v34 = vmul.f32 %v371_v1, %v851_v19  ;;  %v405_v4 = vmul.f32 0.5, %v404_v63  ;;  %v255_v35 = vpop.xlane.xlu1 %254  ;;  %v277_v5 = vpop.xlane.xlu0 %276  ;;  %vm378_vm11 = vweird.f32 %v980_v44  ;;  %vm428_vm1 = vweird.f32 %v984_v58 }
 0x1a4   :  { %v493_v6 = vmul.f32 %v940_v43, %v473_v52  ;;  %v335_v7 = vmul.f32 0.5, %v334_v54  ;;  %v283_v2 = vmul.f32 %v255_v35, %v824_v61  ;;  %v294_v12 = vmul.f32 %v277_v5, %v824_v61 }
 0x1a5   :  { %v497_v36 = vmul.f32 %v940_v43, %v477_v34  ;;  %v406_v13 = vsub.f32 1.5, %v405_v4  ;;  %v1000_v20 = vpop.eup %621 }
 0x1a6   :  { %v513_v19 = vadd.f32 %v948_v53, %v493_v6  ;;  %v336_v9 = vsub.f32 1.5, %v335_v7  ;;  %v1003_v16 = vadd.f32 1e-05, %v283_v2  ;;  %v1005_v17 = vadd.f32 1e-05, %v294_v12  ;;  %v1007_v18 = vpop.eup %623 }
 0x1a7   :  { %v517_v21 = vadd.f32 %v948_v53, %v497_v36  ;;  %v407_v14 = vmul.f32 %v618_v10, %v406_v13  ;;  %v413_v22 = vmul.f32 %v1000_v20, %v977_v42  ;;  %v373_v24 = vmul.f32 %v1007_v18, %v980_v44  ;;  %v626_v25 = vpop.eup %625 }
 0x1a8   :  { %529 = vst [vmem:[#allocation2 + $0x8] sm:$0xff] %v513_v19  ;;  %v337_v23 = vmul.f32 %v620_v47, %v336_v9  ;;  %627 = vrsqrt.f32 %v1003_v16  ;;  %v423_v8 = vmul.f32 %v626_v25, %v984_v58  ;;  %vm419_vm12 = vweird.f32 %v1000_v20 }
 0x1a9   :  { %533 = vst [vmem:[#allocation2 + $0x28] sm:$0xff] %v517_v21  ;;  %v411_v26 = vsel %vm410_vm7, %v618_v10, %v407_v14  ;;  %v414_v3 = vmul.f32 %v1000_v20, %v413_v22  ;;  %629 = vrsqrt.f32 %v1005_v17  ;;  %v374_v30 = vmul.f32 %v1007_v18, %v373_v24  ;;  %vm420_vm14 = vmor %vm418_vm10, %vm419_vm12 }
 0x1aa   :  { %v481_v15 = vmul.f32 %v411_v26, %v866_v28  ;;  %v341_v29 = vsel %vm340_vm9, %v620_v47, %v337_v23  ;;  %v263_v31 = vpop.xlane.xlu2 %262  ;;  %v424_v37 = vmul.f32 %v626_v25, %v423_v8  ;;  %vm379_vm13 = vweird.f32 %v1007_v18 }
 0x1ab   :  { %v474_v32 = vmul.f32 %v341_v29, %v863_v27  ;;  %v415_v33 = vmul.f32 0.5, %v414_v3  ;;  %v375_v11 = vmul.f32 0.5, %v374_v30  ;;  %v287_v10 = vmul.f32 %v263_v31, %v824_v61  ;;  %v279_v28 = vpop.xlane.xlu1 %278  ;;  %vm380_vm0 = vmor %vm378_vm11, %vm379_vm13 }
 0x1ac   :  { %v501_v41 = vmul.f32 %v940_v43, %v481_v15  ;;  %v425_v56 = vmul.f32 0.5, %v424_v37  ;;  %v295_v52 = vmul.f32 %v279_v28, %v824_v61  ;;  %vm429_vm15 = vweird.f32 %v626_v25 }
 0x1ad   :  { %v494_v45 = vmul.f32 %v940_v43, %v474_v32  ;;  %v416_v48 = vsub.f32 1.5, %v415_v33  ;;  %v376_v55 = vsub.f32 1.5, %v375_v11  ;;  %v1032_v57 = vadd.f32 1e-05, %v287_v10  ;;  %vm430_vm2 = vmor %vm428_vm1, %vm429_vm15 }
 0x1ae   :  { %v628_v27 = vpop.eup %627  ;;  %v521_v47 = vadd.f32 %v948_v53, %v501_v41  ;;  %v426_v54 = vsub.f32 1.5, %v425_v56  ;;  %v311_v13 = vadd.f32 1e-05, %v295_v52  ;;  %vm348_vm5 = vweird.f32 %v1003_v16 }
 0x1af   :  { %v630_v59 = vpop.eup %629  ;;  %v514_v60 = vadd.f32 %v948_v53, %v494_v45  ;;  %v417_v62 = vmul.f32 %v1000_v20, %v416_v48  ;;  %v343_v63 = vmul.f32 %v628_v27, %v1003_v16  ;;  %v377_v1 = vmul.f32 %v1007_v18, %v376_v55 }
 0x1b0   :  { %537 = vst [vmem:[#allocation2 + $0x48] sm:$0xff] %v521_v47  ;;  %v453_v34 = vmul.f32 %v630_v59, %v1005_v17  ;;  %631 = vrsqrt.f32 %v1032_v57  ;;  %v427_v6 = vmul.f32 %v626_v25, %v426_v54  ;;  %vm349_vm3 = vweird.f32 %v628_v27 }
 0x1b1   :  { %530 = vst [vmem:[#allocation2 + $0x10] sm:$0xff] %v514_v60  ;;  %v421_v4 = vsel %vm420_vm14, %v1000_v20, %v417_v62  ;;  %v344_v35 = vmul.f32 %v628_v27, %v343_v63  ;;  %v381_v5 = vsel %vm380_vm0, %v1007_v18, %v377_v1  ;;  %633 = vrsqrt.f32 %v311_v13  ;;  %vm350_vm6 = vmor %vm348_vm5, %vm349_vm3 }
 0x1b2   :  { %v482_v42 = vmul.f32 %v421_v4, %v879_v39  ;;  %v454_v7 = vmul.f32 %v630_v59, %v453_v34  ;;  %v275_v2 = vpop.xlane.xlu2 %274  ;;  %v478_v12 = vmul.f32 %v381_v5, %v882_v40  ;;  %v431_v58 = vsel %vm430_vm2, %v626_v25, %v427_v6 }
 0x1b3   :  { %v345_v36 = vmul.f32 0.5, %v344_v35  ;;  %v293_v44 = vmul.f32 %v275_v2, %v824_v61  ;;  %v483_v39 = vmul.f32 %v431_v58, %v876_v38  ;;  %vm459_vm4 = vweird.f32 %v630_v59 }
 0x1b4   :  { %v502_v20 = vmul.f32 %v940_v43, %v482_v42  ;;  %v455_v19 = vmul.f32 0.5, %v454_v7  ;;  %v498_v9 = vmul.f32 %v940_v43, %v478_v12  ;;  %vm458_vm7 = vweird.f32 %v1005_v17 }
 0x1b5   :  { %v346_v18 = vsub.f32 1.5, %v345_v36  ;;  %v309_v40 = vadd.f32 1e-05, %v293_v44  ;;  %v503_v61 = vmul.f32 %v940_v43, %v483_v39  ;;  %vm460_vm8 = vmor %vm458_vm7, %vm459_vm4  ;;  %vm388_vm10 = vweird.f32 %v1032_v57 }
 0x1b6   :  { %v522_v21 = vadd.f32 %v948_v53, %v502_v20  ;;  %v456_v14 = vsub.f32 1.5, %v455_v19  ;;  %v632_v22 = vpop.eup %631  ;;  %v518_v23 = vadd.f32 %v948_v53, %v498_v9  ;;  %vm468_vm13 = vweird.f32 %v311_v13 }
 0x1b7   :  { %v347_v24 = vmul.f32 %v628_v27, %v346_v18  ;;  %v383_v38 = vmul.f32 %v632_v22, %v1032_v57  ;;  %635 = vrsqrt.f32 %v309_v40  ;;  %v523_v26 = vadd.f32 %v948_v53, %v503_v61  ;;  %v634_v16 = vpop.eup %633 }
 0x1b8   :  { %538 = vst [vmem:[#allocation2 + $0x50] sm:$0xff] %v522_v21  ;;  %v457_v25 = vmul.f32 %v630_v59, %v456_v14  ;;  %v463_v32 = vmul.f32 %v634_v16, %v311_v13  ;;  %vm389_vm9 = vweird.f32 %v632_v22  ;;  %vm469_vm12 = vweird.f32 %v634_v16 }
 0x1b9   :  { %534 = vst [vmem:[#allocation2 + $0x30] sm:$0xff] %v518_v23  ;;  %v351_v3 = vsel %vm350_vm6, %v628_v27, %v347_v24  ;;  %v384_v30 = vmul.f32 %v632_v22, %v383_v38  ;;  %vm390_vm11 = vmor %vm388_vm10, %vm389_vm9  ;;  %vm448_vm0 = vweird.f32 %v309_v40 }
 0x1ba   :  { %v475_v15 = vmul.f32 %v351_v3, %v896_v49  ;;  %v461_v29 = vsel %vm460_vm8, %v630_v59, %v457_v25  ;;  %539 = vst [vmem:[#allocation2 + $0x58] sm:$0xff] %v523_v26  ;;  %v464_v10 = vmul.f32 %v634_v16, %v463_v32  ;;  %vm470_vm14 = vmor %vm468_vm13, %vm469_vm12 }
 0x1bb   :  { %v486_v8 = vmul.f32 %v461_v29, %v893_v46  ;;  %v385_v17 = vmul.f32 0.5, %v384_v30 }
 0x1bc   :  { %v495_v31 = vmul.f32 %v940_v43, %v475_v15  ;;  %v465_v46 = vmul.f32 0.5, %v464_v10 }
 0x1bd   :  { %v506_v33 = vmul.f32 %v940_v43, %v486_v8  ;;  %v636_v41 = vpop.eup %635  ;;  %v386_v37 = vsub.f32 1.5, %v385_v17 }
 0x1be   :  { %v515_v11 = vadd.f32 %v948_v53, %v495_v31  ;;  %v443_v28 = vmul.f32 %v636_v41, %v309_v40  ;;  %v466_v47 = vsub.f32 1.5, %v465_v46  ;;  %vm449_vm15 = vweird.f32 %v636_v41 }
 0x1bf   :  { %v526_v49 = vadd.f32 %v948_v53, %v506_v33  ;;  %v387_v45 = vmul.f32 %v632_v22, %v386_v37  ;;  %vm450_vm1 = vmor %vm448_vm0, %vm449_vm15 }
 0x1c0   :  { %531 = vst [vmem:[#allocation2 + $0x18] sm:$0xff] %v515_v11  ;;  %v444_v48 = vmul.f32 %v636_v41, %v443_v28  ;;  %v467_v59 = vmul.f32 %v634_v16, %v466_v47 }
 0x1c1   :  { %542 = vst [vmem:[#allocation2 + $0x70] sm:$0xff] %v526_v49  ;;  %v391_v27 = vsel %vm390_vm11, %v632_v22, %v387_v45 }
 0x1c2   :  { %v479_v55 = vmul.f32 %v391_v27, %v908_v51  ;;  %v445_v56 = vmul.f32 0.5, %v444_v48  ;;  %v471_v63 = vsel %vm470_vm14, %v634_v16, %v467_v59 }
 0x1c3   :  { %v487_v52 = vmul.f32 %v471_v63, %v905_v50 }
 0x1c4   :  { %v499_v60 = vmul.f32 %v940_v43, %v479_v55  ;;  %v446_v62 = vsub.f32 1.5, %v445_v56 }
 0x1c5   :  { %v507_v54 = vmul.f32 %v940_v43, %v487_v52 }
 0x1c6   :  { %v519_v57 = vadd.f32 %v948_v53, %v499_v60  ;;  %v447_v1 = vmul.f32 %v636_v41, %v446_v62 }
 0x1c7   :  { %v527_v4 = vadd.f32 %v948_v53, %v507_v54 }
 0x1c8   :  { %535 = vst [vmem:[#allocation2 + $0x38] sm:$0xff] %v519_v57  ;;  %v451_v51 = vsel %vm450_vm1, %v636_v41, %v447_v1 }
 0x1c9   :  { %v485_v34 = vmul.f32 %v451_v51, %v916_v0  ;;  %543 = vst [vmem:[#allocation2 + $0x78] sm:$0xff] %v527_v4 }
 0x1cb   :  { %v505_v35 = vmul.f32 %v940_v43, %v485_v34 }
 0x1cd   :  { %v525_v50 = vadd.f32 %v948_v53, %v505_v35 }
 0x1cf   :  { %541 = vst [vmem:[#allocation2 + $0x68] sm:$0xff] %v525_v50 }
 0x1d0   :  { %556 = dma.vmem_to_hbm [thread:$0]  %s549_s4, 2048, %s551_s16, [#allocation3], %s665_s17, %s665_s17, %s666_s18  }
 0x1d1   :  { %661 = dma.done.wait [#allocation3], 2048  }
 0x1d2   :  { %662 = vsyncadd [#allocation3], 4294965248 }
 0x1d3   :  { %561 = vsyncpa [#allocation3], 1 }

</bundles_post_ra>
